<compile_context>
chip_gen: v5e
topology: v5e:2x2
jax: 0.10.0
libtpu: 0.0.40
codegen_flags: <defaults>
</compile_context>

<pallas_src>
import math

import jax
import jax.numpy as jnp
from jax.experimental import pallas as pl
from jax.experimental.pallas import tpu as pltpu


_VMEM_BUDGET_BYTES = 40 * 1024 * 1024  # conservative: fits v7x's 64 MiB physical VMEM


def _round_up(x: int, m: int) -> int:
    return ((x + m - 1) // m) * m


def _time_feature_embedding_kernel(xt_ref, wt_ref, o_ref):
    # xt_ref: (d_inp, TN)          f32 transposed time-feature tile (pipelined)
    # wt_ref: (d_inp, d_model_pad) f32 transposed Linear weight (resident)
    # o_ref:  (TN, d_model_pad)    projected embeddings
    # Single MXU push contracting the tiny d_inp axis; an under-filled K is
    # irrelevant because the kernel is HBM-bound on the output store.
    acc = jax.lax.dot_general(
        xt_ref[...],
        wt_ref[...],
        dimension_numbers=(((0,), (0,)), ((), ())),
        preferred_element_type=jnp.float32,
    )
    o_ref[...] = acc.astype(o_ref.dtype)


def _choose_block_tokens(n, d_model_pad, block_tokens, out_itemsize):
    """Token-tile size: multiple of 128 (lane dim of the transposed x block),
    capped so (a) the grid keeps >= 2 steps (both v7x TensorCores get work),
    and (b) double-buffered tiles fit the explicit VMEM budget."""
    if n <= 128:
        return n  # single block covering the whole (tiny) token axis

    tn = max(128, (min(block_tokens, n) // 128) * 128)
    tn = min(tn, _round_up(pl.cdiv(n, 2), 128))  # keep >= 2 grid steps (v7x)

    def _bufs(t):
        x_buf = 8 * t * 4                      # (d_inp, TN) sublane-padded to 8, f32
        o_buf = t * d_model_pad * out_itemsize
        w_buf = 8 * d_model_pad * 4
        return 2 * (x_buf + o_buf + w_buf)     # double-buffered

    while tn > 128 and _bufs(tn) > _VMEM_BUDGET_BYTES:
        tn -= 128
    return tn


def time_feature_embedding(x, weight, *, block_tokens: int = 4096, out_dtype=None):
    """Pallas equivalent of TimeFeatureEmbedding.forward(x).

    x:      (..., d_inp) float time features
    weight: (d_model, d_inp) -- PyTorch nn.Linear weight layout (bias=False)
    out_dtype: optional output dtype (e.g. jnp.bfloat16); accumulation is f32.
    """
    *lead, d_inp = x.shape
    d_model, d_inp_w = weight.shape
    assert d_inp == d_inp_w, (d_inp, d_inp_w)
    out_dtype = jnp.dtype(out_dtype) if out_dtype is not None else jnp.dtype(x.dtype)

    n = int(math.prod(lead)) if lead else 1

    # Pre-transpose x to (d_inp, N): tiny extra pass over the (N, d_inp) input,
    # ~16x smaller x VMEM buffers inside the kernel.
    xt = x.reshape(n, d_inp).astype(jnp.float32).T          # (d_inp, n)
    wt = jnp.asarray(weight, jnp.float32).T                 # (d_inp, d_model)

    # Lane-dense output path: pad d_model to a multiple of 128 if needed.
    d_model_pad = _round_up(d_model, 128)
    if d_model_pad != d_model:
        wt = jnp.pad(wt, ((0, 0), (0, d_model_pad - d_model)))

    tn = _choose_block_tokens(n, d_model_pad, block_tokens, out_dtype.itemsize)
    grid = (pl.cdiv(n, tn),)   # ragged final block handled by Pallas (no jnp.pad)

    # Explicit VMEM budget: double-buffered (x_t + out + weight) tiles plus
    # headroom for Mosaic internal scratch; capped at v7x's 64 MiB physical.
    vmem_bytes = 2 * (
        8 * tn * 4 + tn * d_model_pad * out_dtype.itemsize + 8 * d_model_pad * 4
    )
    vmem_limit = int(min(64 * 1024 * 1024, vmem_bytes + (16 << 20)))

    out = pl.pallas_call(
        _time_feature_embedding_kernel,
        out_shape=jax.ShapeDtypeStruct((n, d_model_pad), out_dtype),
        grid=grid,
        in_specs=[
            pl.BlockSpec((d_inp, tn), lambda i: (0, i)),           # x_t tile (pipelined)
            pl.BlockSpec((d_inp, d_model_pad), lambda i: (0, 0)),  # weight (resident)
        ],
        out_specs=pl.BlockSpec((tn, d_model_pad), lambda i: (i, 0)),
        compiler_params=pltpu.CompilerParams(
            dimension_semantics=("parallel",),   # shard token tiles across TCs (v7x)
            vmem_limit_bytes=vmem_limit,
        ),
        cost_estimate=pl.CostEstimate(
            flops=2 * n * d_inp * d_model,
            transcendentals=0,
            bytes_accessed=(4 * n * d_inp + 4 * d_inp * d_model
                            + out_dtype.itemsize * n * d_model),
        ),
    )(xt, wt)

    if d_model_pad != d_model:
        out = out[:, :d_model]   # only taken when d_model isn't lane-dense
    return out.reshape(*lead, d_model)


if __name__ == "__main__":
    # freq='h' -> d_inp = 4 ; small demo shapes with a lane-dense d_model.
    d_inp, d_model = 4, 128
    B, L = 2, 100   # n = 200 tokens: exercises a 2-step grid + ragged final block

    key = jax.random.PRNGKey(0)
    kx, kw = jax.random.split(key)
    x = jax.random.normal(kx, (B, L, d_inp), dtype=jnp.float32)
    # nn.Linear(d_inp, d_model, bias=False).weight has shape (d_model, d_inp).
    bound = 1.0 / math.sqrt(d_inp)
    weight = jax.random.uniform(kw, (d_model, d_inp), jnp.float32, -bound, bound)

    # block_tokens=128 so the small demo still exercises a multi-tile ragged
    # grid; production default is 4096.
    out = time_feature_embedding(x, weight, block_tokens=128)
    out = jax.block_until_ready(out)

    # Pure-JAX reference: x @ W.T (exact semantics of nn.Linear(bias=False)).
    ref = jnp.einsum("bld,md->blm", x, weight)
    assert out.shape == (B, L, d_model), out.shape
    assert out.dtype == jnp.float32, out.dtype
    assert jnp.allclose(out, ref, atol=1e-5, rtol=1e-5), "mismatch vs reference"

    print("KERNEL_OK")
</pallas_src>

<mosaic_0001>
module attributes {stable_mosaic.version = 11 : i64} {
  func.func @_time_feature_embedding_kernel(%arg0: i32, %arg1: memref<4x128xf32, #tpu.memory_space<vmem>>, %arg2: memref<4x128xf32, #tpu.memory_space<vmem>>, %arg3: memref<128x128xf32, #tpu.memory_space<vmem>>) attributes {dimension_semantics = [#tpu.dimension_semantics<parallel>], iteration_bounds = array<i64: 2>, scalar_prefetch = 0 : i64, scratch_operands = 0 : i64, tpu.core_type = #tpu.core_type<tc>, window_params = [{transform_indices = @transform_0, window_bounds = array<i64: 4, 128>}, {pipeline_mode = #tpu.pipeline_mode<synchronous>, transform_indices = @transform_1, window_bounds = array<i64: 4, 128>}, {transform_indices = @transform_2, window_bounds = array<i64: 128, 128>}]} {
    %c0 = arith.constant 0 : index
    %c0_0 = arith.constant 0 : index
    %0 = vector.load %arg1[%c0, %c0_0] : memref<4x128xf32, #tpu.memory_space<vmem>>, vector<4x128xf32>
    %c0_1 = arith.constant 0 : index
    %c0_2 = arith.constant 0 : index
    %1 = vector.load %arg2[%c0_1, %c0_2] : memref<4x128xf32, #tpu.memory_space<vmem>>, vector<4x128xf32>
    %cst = arith.constant dense<0.000000e+00> : vector<128x128xf32>
    %2 = tpu.matmul %0, %1, %cst {dimension_numbers = #tpu.dot_dimension_numbers<[0], [0], [1], [1], [0, 1, 1, 1], [], []>} : vector<4x128xf32>, vector<4x128xf32>, vector<128x128xf32> -> vector<128x128xf32>
    %c0_3 = arith.constant 0 : index
    %c0_4 = arith.constant 0 : index
    %3 = vector.load %arg3[%c0_3, %c0_4] : memref<128x128xf32, #tpu.memory_space<vmem>>, vector<128x128xf32>
    tpu.vector_store %arg3[%c0_3, %c0_4], %2 {strides = array<i32>} : memref<128x128xf32, #tpu.memory_space<vmem>>, vector<128x128xf32>,
    return
  }
  func.func @transform_0(%arg0: i32) -> (i32, i32) {
    %c0_i32 = arith.constant 0 : i32
    %c0_i32_0 = arith.constant 0 : i32
    return %c0_i32, %arg0 : i32, i32
  }
  func.func @transform_1(%arg0: i32) -> (i32, i32) {
    %c0_i32 = arith.constant 0 : i32
    %c0_i32_0 = arith.constant 0 : i32
    %c0_i32_1 = arith.constant 0 : i32
    return %c0_i32, %c0_i32_0 : i32, i32
  }
  func.func @transform_2(%arg0: i32) -> (i32, i32) {
    %c0_i32 = arith.constant 0 : i32
    %c0_i32_0 = arith.constant 0 : i32
    return %arg0, %c0_i32 : i32, i32
  }
}

</mosaic_0001>

<bundles_post_ra>
// kernel: tpu_custom_call.1
= control target key start
LH: loop header
LB: loop body
LE: loop exit
PB: predicated region body
PF: predicated region fallthrough
CT: control target
= control target key end

     0   :  { %7 = vsyncpa [#allocation3], 0  ;;  %s919_s0 = inlined_call_operand.hbm [shape: f32[4,200], index: 0, kind: input, shape index: {}]   ;;  %s920_s1 = inlined_call_operand.hbm [shape: f32[4,128], index: 1, kind: input, shape index: {}]   ;;  %s921_s2 = inlined_call_operand.hbm [shape: f32[200,128], index: 2, kind: output, shape index: {}]  }
   0x1   :  { %9 = vsyncpa [#allocation3 + $0x1], 0 }
   0x2   :  { %10 = vsyncpa [#allocation6], 0 }
   0x3   :  { %11 = vsyncpa [#allocation4], 0 }
   0x4   :  { %13 = vsyncpa [#allocation4 + $0x1], 0  ;;  %s716_s9 = smov 0   ;;  %s718_s10 = smov 0  }
   0x5   :  { %s720_s11 = smov 0   ;;  %s722_s12 = smov 0  }
   0x6 LB: > { %s737_s13 = sadd.s32 4294967295, %s695_s12   ;;  %s455_s14 = sadd.s32 4294967294, %s695_s12   ;;  %s695_s12 = sphi %s722_s12, %s932_s12   ;;  %s691_s11 = sphi %s720_s11, %s931_s11   ;;  %s687_s10 = sphi %s718_s10, %s930_s10   ;;  %s683_s9 = sphi %s716_s9, %s929_s9  }
   0x7   : > { %p39_p0 = scmp.ne.s32.totalorder %s687_s10, %s683_s9  ;;  %p40_p1 = scmp.eq.s32.totalorder %s737_s13, 0 }
   0x8   : > { %p84_p2 = scmp.eq.s32.totalorder %s737_s13, 1  ;;  %p90_p3 = scmp.eq.s32.totalorder %s455_s14, 1 }
   0x9   : > { %p746_p4 = por %p40_p1, %p39_p0  ;;  %p456_p5 = scmp.ge.s32.totalorder %s695_s12, 1 }
   0xa   : > { %p751_p6 = por %p90_p3, %p39_p0  ;;  %p97_p7 = scmp.lt.s32.totalorder %s695_s12, 3 }
   0xb   : > { %s109_s19 = sshll.u32 %s920_s1, 4  ;;  %s697_s21 = smov [#allocation5]   ;;  %s110_s19 = int_to_ptr.hbm [resolvable:$true] %s109_s19 }
   0xc   : > { %p759_p8 = pnand %p456_p5, %p97_p7  ;;  %s111_s22 = sshll.u32 %s697_s21, 4  ;;  %s112_s22 = int_to_ptr.vmem [resolvable:$true] %s111_s22 }
   0xd   : > { %s769_s23 = sadd.s32 1, %s695_s12   ;;  %s26_s24 = sadd.s32 1, %s691_s11 }
   0xe   : > { %p502_p10 = pneg %p759_p8  ;;  %s23_s25 = ssub.s32 %s695_s12, %s769_s23 }
   0xf   : > { %p24_p12 = scmp.eq.s32.totalorder %s23_s25, 0  ;;  %p33_p13 = scmp.ne.s32.totalorder %s691_s11, %s687_s10 }
  0x10   : > { %p503_p11 = pnand %p502_p10, %p40_p1  ;;  %p34_p0 = scmp.eq.s32.totalorder %s695_s12, 0 }
  0x11   : > { %s778_s26 = scalar_select %p24_p12, %s691_s11, %s26_s24  }
  0x12   : > { %505 = dma.hbm_to_vmem [thread:$0]  (!%p503_p11), %s110_s19, 64, %s112_s22, [#allocation6]  }
  0x13   : > { %p782_p3 = por %p84_p2, %p33_p13  ;;  %p515_p5 = scmp.lt.s32.totalorder %s695_s12, 2 }
  0x14   : > { %s122_s28 = sand.u32 1, %s691_s11   ;;  %s460_s29 = sshll.u32 %s695_s12, 2 }
  0x15   : > { %p35_p7 = por %p34_p0, %p33_p13  ;;  %s459_s30 = sshll.u32 %s122_s28, 2 }
  0x16   : > { %s130_s5 = scalar_lea.hbm %s919_s0, %s460_s29  ;;  %s126_s7 = scalar_lea.vmem [#allocation2], %s459_s30 }
  0x17   : > { %s132_s6 = sshll.u32 %s130_s5, 4  ;;  %s134_s8 = sshll.u32 %s126_s7, 4  ;;  %s133_s6 = int_to_ptr.hbm [resolvable:$true] %s132_s6  ;;  %s135_s8 = int_to_ptr.vmem [resolvable:$true] %s134_s8 }
  0x18   : > { %p792_p10 = pnand %p515_p5, %p35_p7  ;;  %s123_s17 = scalar_lea.sflag [#allocation3], %s122_s28 }
  0x19   : > { %s584_s18 = sshra.s32 %s133_s6, 4  ;;  %s591_s24 = scalar_lea.hbm %s919_s0, 8  ;;  %s585_s18 = int_to_ptr.hbm [resolvable:$true] %s584_s18 }
  0x1a   : > { %s586_s19 = scalar_lea.hbm %s585_s18, 4  ;;  %p588_p11 = pneg %p792_p10 }
  0x1b   : > { %p587_p2 = scmp.ne.s32.totalorder %s585_s18, %s586_s19  ;;  %p592_p0 = scmp.lt.s32.totalorder %s585_s18, %s919_s0 }
  0x1c   : > { %p593_p5 = scmp.lt.s32.totalorder %s591_s24, %s586_s19 }
  0x1d   : > { %p589_p12 = pnand %p588_p11, %p587_p2 }
  0x1e   : > { %p594_p7 = por %p593_p5, %p592_p0 }
  0x1f   : > { %p590_p13 = pneg %p589_p12 }
  0x21   : > { %p595_p9 = pnand %p594_p7, %p590_p13 }
  0x23   : > { %598 = shalt.err (!%p595_p9)
}
  0x24   : > { %509 = dma.hbm_to_vmem [thread:$0]  (!%p792_p10), %s133_s6, 64, %s135_s8, %s123_s17  }
  0x25   : > { %143 = sbr.rel (%p759_p8) target bundleno = 495 (0x1ef), region = 28  ;;  %s809_s28 = sand.u32 (!%p759_p8), 1, %s687_s10  }
  0x26   : > { %s462_s30 = sshll.u32 (!%p759_p8), %s809_s28, 2  ;;  %s146_s3 = scalar_lea.sflag (!%p759_p8), [#allocation3], %s809_s28 }
  0x27   : > { %s149_s4 = scalar_lea.vmem (!%p759_p8), [#allocation2], %s462_s30 }
  0x2a   : > { %670 = dma.done.wait (%p746_p4), %s146_s3, 64  }
  0x2b   : > { %672 = vsyncadd (%p746_p4), %s146_s3, 4294967232 }
  0x2c   : > { %674 = dma.done.wait (%p40_p1), [#allocation6], 64  }
  0x2d   : > { %676 = vsyncadd (%p40_p1), [#allocation6], 4294967232  ;;  %vm264_vm0 = vcmask 1043456   ;;  %v181_v0 = vld [vmem:[%s149_s4] sm:$0xf]  ;;  %vm215_vm1 = vcmask 31744  }
  0x2e   : > { %v182_v1 = vld [vmem:[#allocation5] sm:$0xf]  ;;  %183 = vxpose.xlu0.b32.start.end [1/1] (short) %v181_v0, 128  ;;  %s464_s15 = sshll.u32 %s809_s28, 7  ;;  %s350_s5 = scalar_lea.sflag [#allocation4], %s809_s28 }
  0x2f   : > { %465 = vmatpush.msk.msra.mxu0 %vm264_vm0, %v182_v1  ;;  %492 = vmatpush.msk.msra.mxu1 %vm264_vm0, %v182_v1  ;;  %s838_s20 = scalar_lea.vmem [#allocation7], %s464_s15  ;;  %s483_s6 = sshll.u32 (%p782_p3), %s737_s13, 4 }
  0x30   : > { %493 = vmatpush.msk.msra.mxu2 %vm264_vm0, %v182_v1  ;;  %494 = vmatpush.msk.msra.mxu3 %vm264_vm0, %v182_v1  ;;  %s358_s7 = ssub.s32 (%p782_p3), 25, %s483_s6 }
  0x31   : > { %p359_p1 = scmp.lt.s32.totalorder (%p782_p3), %s358_s7, 16 }
  0xd2   : > { %v199_v2 = vpop.trf.xlu0 }
  0xd3   : > { %466 = vmatmul.msk.f32.vlgmr.msra.gmra.mxu0 %vm215_vm1, %v199_v2 }
  0xda   : > { %v200_v3 = vpop.trf.xlu0 }
  0xdb   : > { %467 = vmatmul.msk.f32.gmra.mxu0 %vm215_vm1, %v200_v3 }
  0xe2   : > { %v201_v4 = vpop.trf.xlu0 }
  0xe3   : > { %468 = vmatmul.msk.f32.gmra.mxu0 %vm215_vm1, %v201_v4 }
  0xea   : > { %v202_v5 = vpop.trf.xlu0 }
  0xeb   : > { %469 = vmatmul.msk.f32.gmra.mxu0 %vm215_vm1, %v202_v5 }
  0xf2   : > { %v203_v6 = vpop.trf.xlu0 }
  0xf3   : > { %470 = vmatmul.msk.f32.vlgmr.msra.gmra.mxu1 %vm215_vm1, %v203_v6 }
  0xfa   : > { %v204_v7 = vpop.trf.xlu0 }
  0xfb   : > { %471 = vmatmul.msk.f32.gmra.mxu1 %vm215_vm1, %v204_v7 }
 0x102   : > { %v205_v8 = vpop.trf.xlu0 }
 0x103   : > { %472 = vmatmul.msk.f32.gmra.mxu1 %vm215_vm1, %v205_v8 }
 0x10a   : > { %v206_v9 = vpop.trf.xlu0 }
 0x10b   : > { %473 = vmatmul.msk.f32.gmra.mxu1 %vm215_vm1, %v206_v9 }
 0x112   : > { %v207_v10 = vpop.trf.xlu0 }
 0x113   : > { %474 = vmatmul.msk.f32.vlgmr.msra.gmra.mxu2 %vm215_vm1, %v207_v10 }
 0x11a   : > { %v208_v11 = vpop.trf.xlu0 }
 0x11b   : > { %475 = vmatmul.msk.f32.gmra.mxu2 %vm215_vm1, %v208_v11 }
 0x122   : > { %v209_v12 = vpop.trf.xlu0 }
 0x123   : > { %476 = vmatmul.msk.f32.gmra.mxu2 %vm215_vm1, %v209_v12 }
 0x12a   : > { %v210_v13 = vpop.trf.xlu0 }
 0x12b   : > { %477 = vmatmul.msk.f32.gmra.mxu2 %vm215_vm1, %v210_v13 }
 0x132   : > { %v211_v14 = vpop.trf.xlu0 }
 0x133   : > { %478 = vmatmul.msk.f32.vlgmr.msra.gmra.mxu3 %vm215_vm1, %v211_v14 }
 0x13a   : > { %v212_v15 = vpop.trf.xlu0 }
 0x13b   : > { %479 = vmatmul.msk.f32.gmra.mxu3 %vm215_vm1, %v212_v15 }
 0x142   : > { %v213_v16 = vpop.trf.xlu0 }
 0x143   : > { %480 = vmatmul.msk.f32.gmra.mxu3 %vm215_vm1, %v213_v16 }
 0x14a   : > { %v214_v17 = vpop.trf.xlu0 }
 0x14b   : > { %481 = vmatmul.msk.f32.gmra.mxu3 %vm215_vm1, %v214_v17 }
 0x150   : > { %v285_v18 = vpop.f32.mrf.mxu0 }
 0x151   : > { %333 = vst [vmem:[%s838_s20] sm:$0xff] %v285_v18 }
 0x158   : > { %v288_v19 = vpop.f32.mrf.mxu0 }
 0x159   : > { %334 = vst [vmem:[%s838_s20 + $0x8] sm:$0xff] %v288_v19 }
 0x160   : > { %v291_v20 = vpop.f32.mrf.mxu0 }
 0x161   : > { %335 = vst [vmem:[%s838_s20 + $0x10] sm:$0xff] %v291_v20 }
 0x168   : > { %v294_v21 = vpop.f32.mrf.mxu0 }
 0x169   : > { %336 = vst [vmem:[%s838_s20 + $0x18] sm:$0xff] %v294_v21 }
 0x170   : > { %v297_v22 = vpop.f32.mrf.mxu1 }
 0x171   : > { %337 = vst [vmem:[%s838_s20 + $0x20] sm:$0xff] %v297_v22 }
 0x178   : > { %v300_v23 = vpop.f32.mrf.mxu1 }
 0x179   : > { %338 = vst [vmem:[%s838_s20 + $0x28] sm:$0xff] %v300_v23 }
 0x180   : > { %v303_v24 = vpop.f32.mrf.mxu1 }
 0x181   : > { %339 = vst [vmem:[%s838_s20 + $0x30] sm:$0xff] %v303_v24 }
 0x188   : > { %v306_v25 = vpop.f32.mrf.mxu1 }
 0x189   : > { %340 = vst [vmem:[%s838_s20 + $0x38] sm:$0xff] %v306_v25 }
 0x196   : > { %v309_v26 = vpop.f32.mrf.mxu2 }
 0x197   : > { %341 = vst [vmem:[%s838_s20 + $0x40] sm:$0xff] %v309_v26 }
 0x19e   : > { %v312_v27 = vpop.f32.mrf.mxu2 }
 0x19f   : > { %342 = vst [vmem:[%s838_s20 + $0x48] sm:$0xff] %v312_v27 }
 0x1a6   : > { %v315_v28 = vpop.f32.mrf.mxu2 }
 0x1a7   : > { %343 = vst [vmem:[%s838_s20 + $0x50] sm:$0xff] %v315_v28 }
 0x1ae   : > { %v318_v29 = vpop.f32.mrf.mxu2 }
 0x1af   : > { %344 = vst [vmem:[%s838_s20 + $0x58] sm:$0xff] %v318_v29 }
 0x1b6   : > { %v321_v30 = vpop.f32.mrf.mxu3 }
 0x1b7   : > { %345 = vst [vmem:[%s838_s20 + $0x60] sm:$0xff] %v321_v30 }
 0x1be   : > { %v324_v31 = vpop.f32.mrf.mxu3 }
 0x1bf   : > { %346 = vst [vmem:[%s838_s20 + $0x68] sm:$0xff] %v324_v31 }
 0x1c6   : > { %v327_v32 = vpop.f32.mrf.mxu3 }
 0x1c7   : > { %347 = vst [vmem:[%s838_s20 + $0x70] sm:$0xff] %v327_v32 }
 0x1cb   : > { %356 = sbr.rel (!%p782_p3) target bundleno = 495 (0x1ef), region = 40 }
 0x1ce   : > { %v330_v33 = vpop.f32.mrf.mxu3 }
 0x1cf   : > { %348 = vst [vmem:[%s838_s20 + $0x78] sm:$0xff] %v330_v33 }
 0x1d0   : > { %s934_s7 = smov (!%p359_p1, %s358_s7), 16 }
 0x1d1   : > { %s484_s8 = sshll.u32 %s934_s7, 3 }
 0x1d2   : > { %s362_s14 = ssub.s32 128, %s484_s8 }
 0x1d3   : > { %s363_s17 = sshll.u32 %s362_s14, 4 }
 0x1d4   : > { %364 = vsyncadd %s350_s5, %s363_s17  ;;  %p865_p4 = scmp.ne.s32.totalorder %s484_s8, 0  ;;  %s491_s18 = sshll.u32 %s737_s13, 7 }
 0x1d5   : > { %s367_s22 = scalar_lea.hbm %s921_s2, %s491_s18  ;;  %s369_s24 = sshll.u32 %s838_s20, 4  ;;  %s874_s24 = int_to_ptr.vmem [resolvable:$true] %s369_s24 }
 0x1d6   : > { %s371_s25 = sshll.u32 %s367_s22, 4  ;;  %s488_s29 = sshll.u32 %s934_s7, 7  ;;  %s876_s25 = int_to_ptr.hbm [resolvable:$true] %s371_s25 }
 0x1d7   : > { %s614_s30 = sshra.s32 %s874_s24, 4  ;;  %s616_s3 = sshrl.u32 %s488_s29, 4  ;;  %s615_s30 = int_to_ptr.vmem [resolvable:$true] %s614_s30 }
 0x1d8   : > { %s621_s4 = scalar_lea.vmem %s615_s30, %s616_s3  ;;  %s698_s13 = smov [#allocation7]  }
 0x1d9   : > { %p622_p8 = scmp.ne.s32.totalorder %s615_s30, %s621_s4  ;;  %s625_s15 = scalar_lea.vmem %s698_s13, 256 }
 0x1da   : > { %p627_p10 = scmp.lt.s32.totalorder %s625_s15, %s621_s4 }
 0x1db   : > { %p623_p9 = pnand %p622_p8, %p865_p4 }
 0x1dd   : > { %p624_p3 = pneg %p623_p9 }
 0x1df   : > { %p629_p2 = pnand %p627_p10, %p624_p3 }
 0x1e1   : > { %632 = shalt.err (!%p629_p2)
}
 0x1e2   : > { %s633_s20 = sshra.s32 %s876_s25, 4  ;;  %s644_s17 = scalar_lea.hbm %s921_s2, 200  ;;  %s634_s20 = int_to_ptr.hbm [resolvable:$true] %s633_s20 }
 0x1e3   : > { %s640_s6 = scalar_lea.hbm %s634_s20, %s616_s3  ;;  %p645_p0 = scmp.lt.s32.totalorder %s634_s20, %s921_s2 }
 0x1e4   : > { %p641_p11 = scmp.ne.s32.totalorder %s634_s20, %s640_s6  ;;  %p646_p5 = scmp.lt.s32.totalorder %s644_s17, %s640_s6 }
 0x1e6   : > { %p642_p12 = pnand %p641_p11, %p865_p4  ;;  %p647_p7 = por %p646_p5, %p645_p0 }
 0x1e8   : > { %p643_p13 = pneg %p642_p12 }
 0x1ea   : > { %p648_p1 = pnand %p647_p7, %p643_p13 }
 0x1ec   : > { %651 = shalt.err (!%p648_p1)
}
 0x1ed   : > { %s699_s21 = smov 128   ;;  %s700_s22 = smov 8  }
 0x1ee   : > { %377 = dma.vmem_to_hbm [thread:$0]  (%p865_p4), %s874_s24, %s488_s29, %s876_s25, %s350_s5, %s699_s21, %s699_s21, %s700_s22  }
 0x1ef PF: > { %s386_s30 = sand.u32 1, %s683_s9   ;;  %p928_p8 = scmp.ge.s32.totalorder %s695_s12, 2 }
 0x1f0   : > { %s387_s3 = scalar_lea.sflag [#allocation4], %s386_s30 }
 0x1f1   : > { %p511_p9 = pnand %p928_p8, %p751_p6 }
 0x1f3   : > { %p512_p3 = pneg %p511_p9 }
 0x1f5   : > { %678 = dma.done.wait (%p512_p3), %s387_s3, 2048  }
 0x1f6   : > { %680 = vsyncadd (%p512_p3), %s387_s3, 4294965248  ;;  %p16_p10 = scmp.ge.s32.totalorder %s769_s23, 4   ;;  %s929_s9 = smov %s687_s10 }
 0x1f7   : > { %s930_s10 = smov %s691_s11  ;;  %s931_s11 = smov %s778_s26 }
 0x1f8   : > { %s932_s12 = smov %s769_s23  ;;  %18 = sbr.rel (!%p16_p10) target bundleno = 6 (0x6), region = 77 }
 0x1fd   :  { %393 = vsyncpa [#allocation3], 1 }
 0x1fe   :  { %395 = vsyncpa [#allocation3 + $0x1], 1 }
 0x1ff   :  { %396 = vsyncpa [#allocation6], 1 }
 0x200   :  { %397 = vsyncpa [#allocation4], 1 }
 0x201   :  { %399 = vsyncpa [#allocation4 + $0x1], 1 }

</bundles_post_ra>
